<compile_context>
chip_gen: v7x
topology: tpu7x:2x2x1
jax: 0.10.0
libtpu: 0.0.40
codegen_flags: <defaults>
</compile_context>

<pallas_src>
import functools

import jax
import jax.numpy as jnp
from jax import lax
from jax.experimental import pallas as pl
from jax.experimental.pallas import tpu as pltpu


def _group_conv_kernel(x_ref, w_ref, o_ref, *scratch,
                       resident_tiled, nk_blocks, cast_x):
    """One (m, n, k) grid step of the K-split matmul: out[m,n] += x[m,k] @ w[n,k].T."""
    k = pl.program_id(2)
    nk = pl.num_programs(2)
    # f32 outputs accumulate directly in the output block.  This relies on the
    # grid being (m, n, k) with k innermost and a k-invariant output index_map.
    acc_ref = scratch[0] if scratch else o_ref

    @pl.when(k == 0)
    def _():
        acc_ref[...] = jnp.zeros_like(acc_ref)

    if resident_tiled:
        # Whole weight resident in VMEM, pre-tiled host-side to (nn*nk, tn, tk).
        # Leading-axis block indexing is pure scalar address math (contiguous
        # block feed to the MXU; no materialised VMEM copy per grid step).
        n = pl.program_id(1)
        w_tile = w_ref[n * nk_blocks + k]
    else:
        w_tile = w_ref[...]

    x = x_ref[...]
    if cast_x:
        # VPU cast rides in otherwise-idle VALU slots; the MXU is binding.
        x = x.astype(w_tile.dtype)

    # x: (tm, tk), w_tile: (tn, tk) -> (tm, tn); contract K (dim 1 of both).
    # The transposed contraction is native on the MXU (no W.T in HBM).
    acc_ref[...] += lax.dot_general(
        x,
        w_tile,
        dimension_numbers=(((1,), (1,)), ((), ())),
        preferred_element_type=jnp.float32,
    )

    if scratch:
        @pl.when(k == nk - 1)
        def _():
            o_ref[...] = acc_ref[...].astype(o_ref.dtype)


def _round_up(x, m):
    return (x + m - 1) // m * m


def _tpu_generation():
    """Best-effort TPU generation (5/6/7); defaults to 6 when unknown."""
    try:
        kind = jax.devices()[0].device_kind.lower()
    except Exception:
        return 6
    for g in (7, 6, 5):
        if f"v{g}" in kind:
            return g
    return 6


def _choose_tile(dim, cap, gran):
    """Pick (tile, padded_dim): tile is a multiple of `gran` (>=128), <= cap;
    padded_dim is a multiple of tile.  Prefers the largest tile and only backs
    off (in `gran` steps) when the zero padding it forces exceeds ~1/8 of the
    true dim.  Fixes the old divisor-collapse that produced 128-wide tiles."""
    d128 = _round_up(dim, 128)
    if d128 <= cap:
        return d128, d128                 # whole (lane-padded) dim in one tile
    t = cap
    while t > gran and (_round_up(dim, t) - dim) * 8 > dim:
        t -= gran
    return t, _round_up(dim, t)


@functools.partial(jax.jit, static_argnames=("block_size", "compute_dtype"))
def horizon_group_conv(hidden, weight, *, block_size=32, compute_dtype=jnp.bfloat16):
    """hidden: (B, T, idim), weight: (odim, idim) -> (B, T, odim).

    compute_dtype=jnp.float32 gives strict (MXU-f32) parity with the PyTorch
    module at lower throughput; the default bf16 path accumulates in f32.
    """
    B, T, idim = hidden.shape
    odim, k_w = weight.shape
    assert k_w == idim
    # Same constraint the PyTorch module asserts; block_size does not constrain
    # the tiling (the grouped sum is just a K-split of the full matmul).
    assert idim % block_size == 0

    out_dtype = hidden.dtype
    M = B * T

    gen = _tpu_generation()
    if gen >= 7:
        # v7x: 64 MiB VMEM / TensorCore -> tighter tiles and accounting.
        tm_cap, tn_cap, vmem_cap = 512, 512, 48 << 20
    else:
        # v5e/v6e: 128 MiB VMEM and HBM-bound in the streamed-weight regime ->
        # bigger output-stationary tiles cut W/x re-streaming ~linearly.
        tm_cap, tn_cap, vmem_cap = 1024, 1024, 96 << 20
    tk_cap = 512
    k_gran = 256                       # 2x256 MXU on v6e/v7x; still /128 on v5e
    n_gran = 128 if gen == 5 else 256

    # ---- tile selection ------------------------------------------------------
    # M is ragged (pl.cdiv grid; tail rows masked on writeback).  K and N are
    # padded up to a multiple of their tile; K MUST stay zero padded.
    tm = min(tm_cap, _round_up(M, 16))
    tk, Kpad = _choose_tile(idim, tk_cap, k_gran)
    tn, Npad = _choose_tile(odim, tn_cap, n_gran)
    nn, nk = Npad // tn, Kpad // tk
    nm = pl.cdiv(M, tm)
    if gen >= 7:
        # Two TensorCores split the "parallel" axes: make sure both get work.
        while nm * nn < 2 and tm > 16:
            tm = _round_up(tm // 2, 16)
            nm = pl.cdiv(M, tm)

    cbytes = jnp.dtype(compute_dtype).itemsize
    obytes = jnp.dtype(out_dtype).itemsize

    # ---- weight: resident in VMEM when small ---------------------------------
    # Counted at its real buffer count (default double buffering).
    # TODO(synk): pipeline_mode=pl.Buffered(1) would halve this footprint.
    w_vmem_bytes = 2 * Npad * Kpad * cbytes
    resident_w = w_vmem_bytes <= (8 << 20)

    w2d = weight.astype(compute_dtype)            # (N, K): no W.T materialised
    if Npad != odim or Kpad != idim:
        w2d = jnp.pad(w2d, ((0, Npad - odim), (0, Kpad - idim)))

    resident_tiled = False
    if resident_w and nn == 1 and nk == 1:
        w_arg = w2d                               # the whole weight IS the tile
        w_spec = pl.BlockSpec((Npad, Kpad), lambda m, n, k: (0, 0))
    elif resident_w:
        resident_tiled = True
        w_arg = jnp.transpose(
            w2d.reshape(nn, tn, nk, tk), (0, 2, 1, 3)
        ).reshape(nn * nk, tn, tk)                # contiguous (tn, tk) blocks
        w_spec = pl.BlockSpec((nn * nk, tn, tk), lambda m, n, k: (0, 0, 0))
    else:
        w_arg = w2d
        w_spec = pl.BlockSpec((tn, tk), lambda m, n, k: (n, k))

    # ---- activations ----------------------------------------------------------
    # When x is re-streamed at most twice (nn <= 2) it is cheaper to DMA it as
    # f32 and cast in-kernel than to burn a full HBM round trip on a wrapper
    # cast (4 B/elem vs 8 B/elem of HBM traffic at nn == 1).
    cast_in_kernel = (
        hidden.dtype == jnp.float32
        and compute_dtype == jnp.bfloat16
        and nn <= 2
    )
    x_dtype = hidden.dtype if cast_in_kernel else compute_dtype
    x2d = hidden.reshape(M, idim)
    if x2d.dtype != x_dtype:
        x2d = x2d.astype(x_dtype)
    if Kpad != idim:
        x2d = jnp.pad(x2d, ((0, 0), (0, Kpad - idim)))   # zero pad: reduction axis
    xbytes = jnp.dtype(x_dtype).itemsize

    # f32 outputs accumulate directly in the output block; otherwise use a small
    # f32 scratch and cast on the last K step.
    use_scratch = out_dtype != jnp.float32
    scratch_shapes = [pltpu.VMEM((tm, tn), jnp.float32)] if use_scratch else []

    # ---- precise VMEM accounting ----------------------------------------------
    vmem_est = 2 * tm * tk * xbytes                                    # x (dbl buf)
    vmem_est += w_vmem_bytes if resident_w else 2 * tn * tk * cbytes   # w
    vmem_est += 2 * tm * tn * obytes                                   # out (dbl buf)
    if use_scratch:
        vmem_est += tm * tn * 4                                        # f32 acc
    if cast_in_kernel:
        vmem_est += tm * tk * cbytes                                   # bf16 x copy
    vmem_limit = int(min(vmem_cap, max(32 << 20, vmem_est + (4 << 20))))

    cost = pl.CostEstimate(
        flops=2 * M * Kpad * Npad,
        transcendentals=0,
        bytes_accessed=int(M * Kpad * xbytes + Npad * Kpad * cbytes
                           + M * Npad * obytes),
    )

    out2d = pl.pallas_call(
        functools.partial(
            _group_conv_kernel,
            resident_tiled=resident_tiled,
            nk_blocks=nk,
            cast_x=cast_in_kernel,
        ),
        out_shape=jax.ShapeDtypeStruct((M, Npad), out_dtype),
        grid_spec=pltpu.PrefetchScalarGridSpec(
            num_scalar_prefetch=0,
            # k (the fused-group reduction) MUST stay innermost: the f32
            # accumulate-in-place output path depends on it.
            grid=(nm, nn, nk),
            in_specs=[
                pl.BlockSpec((tm, tk), lambda m, n, k: (m, k)),
                w_spec,
            ],
            out_specs=pl.BlockSpec((tm, tn), lambda m, n, k: (m, n)),
            scratch_shapes=scratch_shapes,
        ),
        compiler_params=pltpu.CompilerParams(
            dimension_semantics=("parallel", "parallel", "arbitrary"),
            vmem_limit_bytes=vmem_limit,
        ),
        cost_estimate=cost,
    )(x2d, w_arg)

    return out2d[:, :odim].reshape(B, T, odim)


if __name__ == "__main__":
    key = jax.random.PRNGKey(0)
    k_x, k_w, k_x2, k_w2 = jax.random.split(key, 4)

    # --- Test 1: small module-consistent shapes ------------------------------
    B, T, idim, odim = 2, 8, 256, 64
    block_size = 32   # module default; no 128-alignment required
    hidden = jax.random.normal(k_x, (B, T, idim), dtype=jnp.float32)
    weight = jax.random.normal(k_w, (odim, idim), dtype=jnp.float32) * 0.02

    out = horizon_group_conv(hidden, weight, block_size=block_size)
    out = jax.block_until_ready(out)
    assert out.shape == (B, T, odim)
    assert out.dtype == hidden.dtype

    # Reference 1 (tight): same bf16-rounded inputs, f32 accumulation.
    hb = hidden.astype(jnp.bfloat16).astype(jnp.float32)
    wb = weight.astype(jnp.bfloat16).astype(jnp.float32)
    ref_bf16 = jnp.einsum("btk,ok->bto", hb, wb)
    assert jnp.allclose(out, ref_bf16, rtol=1e-3, atol=1e-3)

    # Reference 2 (loose): full-precision module math.
    ref_f32 = jnp.einsum("btk,ok->bto", hidden, weight)
    assert jnp.allclose(out, ref_f32, rtol=2e-2, atol=2e-2)

    # --- Test 2: ragged M, multi-step K reduction, padded odim, resident W ----
    B2, T2, idim2, odim2 = 4, 301, 1024, 192
    hidden2 = jax.random.normal(k_x2, (B2, T2, idim2), dtype=jnp.float32)
    weight2 = jax.random.normal(k_w2, (odim2, idim2), dtype=jnp.float32) * 0.02
    out2 = jax.block_until_ready(
        horizon_group_conv(hidden2, weight2, block_size=32))
    assert out2.shape == (B2, T2, odim2)
    hb2 = hidden2.astype(jnp.bfloat16).astype(jnp.float32)
    wb2 = weight2.astype(jnp.bfloat16).astype(jnp.float32)
    ref2 = jnp.einsum("btk,ok->bto", hb2, wb2)
    assert jnp.allclose(out2, ref2, rtol=1e-3, atol=1e-3)

    print("KERNEL_OK")
</pallas_src>

<mosaic_0001>
module attributes {stable_mosaic.version = 11 : i64} {
  func.func @_group_conv_kernel(%arg0: i32, %arg1: i32, %arg2: i32, %arg3: memref<16x256xf32, #tpu.memory_space<vmem>>, %arg4: memref<128x256xbf16, #tpu.memory_space<vmem>>, %arg5: memref<16x128xf32, #tpu.memory_space<vmem>>) attributes {dimension_semantics = [#tpu.dimension_semantics<parallel>, #tpu.dimension_semantics<parallel>, #tpu.dimension_semantics<arbitrary>], iteration_bounds = array<i64: 1, 1, 1>, scalar_prefetch = 0 : i64, scratch_operands = 0 : i64, tpu.core_type = #tpu.core_type<tc>, window_params = [{transform_indices = @transform_0, window_bounds = array<i64: 16, 256>}, {pipeline_mode = #tpu.pipeline_mode<synchronous>, transform_indices = @transform_1, window_bounds = array<i64: 128, 256>}, {transform_indices = @transform_2, window_bounds = array<i64: 16, 128>}]} {
    %c0_i32 = arith.constant 0 : i32
    %0 = arith.cmpi eq, %arg2, %c0_i32 : i32
    %1 = arith.extui %0 : i1 to i32
    %c0_i32_0 = arith.constant 0 : i32
    %2 = arith.cmpi ne, %1, %c0_i32_0 : i32
    scf.if %2 {
      %cst_8 = arith.constant 0.000000e+00 : f32
      %10 = vector.broadcast %cst_8 : f32 to vector<16x128xf32>
      %c0_9 = arith.constant 0 : index
      %c0_10 = arith.constant 0 : index
      %11 = vector.load %arg5[%c0_9, %c0_10] : memref<16x128xf32, #tpu.memory_space<vmem>>, vector<16x128xf32>
      tpu.vector_store %arg5[%c0_9, %c0_10], %10 {strides = array<i32>} : memref<16x128xf32, #tpu.memory_space<vmem>>, vector<16x128xf32>,
    } else {
    }
    %c0 = arith.constant 0 : index
    %c0_1 = arith.constant 0 : index
    %3 = vector.load %arg4[%c0, %c0_1] : memref<128x256xbf16, #tpu.memory_space<vmem>>, vector<128x256xbf16>
    %c0_2 = arith.constant 0 : index
    %c0_3 = arith.constant 0 : index
    %4 = vector.load %arg3[%c0_2, %c0_3] : memref<16x256xf32, #tpu.memory_space<vmem>>, vector<16x256xf32>
    %5 = arith.truncf %4 : vector<16x256xf32> to vector<16x256xbf16>
    %c0_4 = arith.constant 0 : index
    %c0_5 = arith.constant 0 : index
    %6 = vector.load %arg5[%c0_4, %c0_5] : memref<16x128xf32, #tpu.memory_space<vmem>>, vector<16x128xf32>
    %cst = arith.constant dense<0.000000e+00> : vector<16x128xf32>
    %7 = tpu.matmul %5, %3, %cst {dimension_numbers = #tpu.dot_dimension_numbers<[1], [1], [0], [0], [0, 0, 1, 0], [], []>} : vector<16x256xbf16>, vector<128x256xbf16>, vector<16x128xf32> -> vector<16x128xf32>
    %8 = arith.addf %6, %7 : vector<16x128xf32>
    %c0_6 = arith.constant 0 : index
    %c0_7 = arith.constant 0 : index
    %9 = vector.load %arg5[%c0_6, %c0_7] : memref<16x128xf32, #tpu.memory_space<vmem>>, vector<16x128xf32>
    tpu.vector_store %arg5[%c0_6, %c0_7], %8 {strides = array<i32>} : memref<16x128xf32, #tpu.memory_space<vmem>>, vector<16x128xf32>,
    return
  }
  func.func @transform_0(%arg0: i32, %arg1: i32, %arg2: i32) -> (i32, i32) {
    %c0_i32 = arith.constant 0 : i32
    return %arg0, %arg2 : i32, i32
  }
  func.func @transform_1(%arg0: i32, %arg1: i32, %arg2: i32) -> (i32, i32) {
    %c0_i32 = arith.constant 0 : i32
    %c0_i32_0 = arith.constant 0 : i32
    %c0_i32_1 = arith.constant 0 : i32
    return %c0_i32, %c0_i32_0 : i32, i32
  }
  func.func @transform_2(%arg0: i32, %arg1: i32, %arg2: i32) -> (i32, i32) {
    %c0_i32 = arith.constant 0 : i32
    return %arg0, %arg1 : i32, i32
  }
}

</mosaic_0001>

<bundles_post_ra>
// kernel: horizon_group_conv.1
= control target key start
LH: loop header
LB: loop body
LE: loop exit
PB: predicated region body
PF: predicated region fallthrough
CT: control target
= control target key end

     0   :  { %s293_s1 = inlined_call_operand.vmem [shape: bf16[128,256], index: 1, kind: input, shape index: {}]   ;;  %s294_s0 = inlined_call_operand.vmem [shape: f32[16,256], index: 0, kind: input, shape index: {}]   ;;  %s295_s2 = inlined_call_operand.vmem [shape: f32[16,128], index: 2, kind: output, shape index: {}]  }
   0x1   :  { %v188_v0 = vld [vmem:[%s293_s1 + $0x4] ss:$8 sps:$4 sm:$0xff]   ;;  %v190_v1 = vld [vmem:[%s293_s1] ss:$8 sps:$4 sm:$0xff]   ;;  %v191_v2 = vld [vmem:[%s293_s1 + $0x14] ss:$8 sps:$4 sm:$0xff]  }
   0x2   :  { %122 = vmatprep.subr.bf16.mxu0 %v188_v0  ;;  %v193_v3 = vld [vmem:[%s293_s1 + $0x10] ss:$8 sps:$4 sm:$0xff]   ;;  %v194_v4 = vld [vmem:[%s293_s1 + $0x24] ss:$8 sps:$4 sm:$0xff]   ;;  %v196_v8 = vld [vmem:[%s293_s1 + $0x20] ss:$8 sps:$4 sm:$0xff]  }
   0x3   :  { %123 = vmatpush1.bf16.xpose.msra.mxu0 %v190_v1  ;;  %v35_v5 = vld [vmem:[%s294_s0 + $0x8] sm:$0xff]  ;;  %v37_v6 = vld [vmem:[%s294_s0 + $0x18] sm:$0xff]  ;;  %v34_v19 = vld [vmem:[%s294_s0] sm:$0xff] }
   0x4   :  { %124 = vmatprep.subr.bf16.mxu0 %v191_v2  ;;  %v39_v7 = vpack.c.bf16 %v37_v6, %v35_v5  ;;  %v197_v9 = vld [vmem:[%s293_s1 + $0x34] ss:$8 sps:$4 sm:$0xff]   ;;  %v199_v10 = vld [vmem:[%s293_s1 + $0x30] ss:$8 sps:$4 sm:$0xff]   ;;  %v200_v11 = vld [vmem:[%s293_s1 + $0x44] ss:$8 sps:$4 sm:$0xff]  }
   0x5   :  { %v202_v12 = vld [vmem:[%s293_s1 + $0x40] ss:$8 sps:$4 sm:$0xff]   ;;  %v203_v13 = vld [vmem:[%s293_s1 + $0x54] ss:$8 sps:$4 sm:$0xff]   ;;  %v205_v14 = vld [vmem:[%s293_s1 + $0x50] ss:$8 sps:$4 sm:$0xff]  }
   0x6   :  { %154 = vmatprep.mubr.bf16.mxu0 %v39_v7  ;;  %v206_v15 = vld [vmem:[%s293_s1 + $0x64] ss:$8 sps:$4 sm:$0xff]   ;;  %v208_v16 = vld [vmem:[%s293_s1 + $0x60] ss:$8 sps:$4 sm:$0xff]   ;;  %v209_v17 = vld [vmem:[%s293_s1 + $0x74] ss:$8 sps:$4 sm:$0xff]  }
   0x7   :  { %v211_v18 = vld [vmem:[%s293_s1 + $0x70] ss:$8 sps:$4 sm:$0xff]  }
   0x8   :  { %v36_v20 = vld [vmem:[%s294_s0 + $0x10] sm:$0xff] }
   0x9   :  { %v38_v21 = vpack.c.bf16 %v36_v20, %v34_v19 }
   0xb   :  { %125 = vmatpush1.bf16.xpose.msra.mxu0 %v193_v3 }
   0xc   :  { %126 = vmatprep.subr.bf16.mxu0 %v194_v4 }
  0x13   :  { %127 = vmatpush1.bf16.xpose.msra.mxu0 %v196_v8 }
  0x14   :  { %128 = vmatprep.subr.bf16.mxu0 %v197_v9 }
  0x1b   :  { %129 = vmatpush1.bf16.xpose.msra.mxu0 %v199_v10 }
  0x1c   :  { %130 = vmatprep.subr.bf16.mxu0 %v200_v11 }
  0x23   :  { %131 = vmatpush1.bf16.xpose.msra.mxu0 %v202_v12 }
  0x24   :  { %132 = vmatprep.subr.bf16.mxu0 %v203_v13 }
  0x2b   :  { %133 = vmatpush1.bf16.xpose.msra.mxu0 %v205_v14 }
  0x2c   :  { %134 = vmatprep.subr.bf16.mxu0 %v206_v15 }
  0x33   :  { %135 = vmatpush1.bf16.xpose.msra.mxu0 %v208_v16 }
  0x34   :  { %136 = vmatprep.subr.bf16.mxu0 %v209_v17 }
  0x3b   :  { %137 = vmatpush1.bf16.xpose.msra.mxu0 %v211_v18 }
  0x42   :  { %155 = vmatmul.mubr.bf16.vlgmr.msra.gmra.mrb[0].mxu0 %v38_v21 }
 0x115   :  { %v156_v22 = vpop.f32.mrb[0].mxu0 }
 0x116   :  { %v158_v23 = vpop.f32.mrb[1].mxu0  ;;  %165 = vst [vmem:[%s295_s2] sm:$0xff] %v156_v22 }
 0x117   :  { %v159_v24 = vpop.f32.mrb[2].mxu0 }
 0x118   :  { %v161_v25 = vpop.f32.mrb[3].mxu0  ;;  %166 = vst [vmem:[%s295_s2 + $0x8] sm:$0xff] %v159_v24 }

</bundles_post_ra>
